<compile_context>
chip_gen: v7x
topology: tpu7x:2x2x1
jax: 0.10.0
libtpu: 0.0.40
codegen_flags: <defaults>
</compile_context>

<pallas_src>
import math
from functools import partial

import jax
import jax.numpy as jnp
from jax import lax
from jax.experimental import pallas as pl
from jax.experimental.pallas import tpu as pltpu

# ----------------------------------------------------------------------------
# Small synthetic configuration (spatial shape scaled down from the real
# [10, 200, 704] ROI grid so the dense-equivalent test is quick).
# ----------------------------------------------------------------------------
SPATIAL_SHAPE = (4, 16, 32)         # (Z, Y, X)
INPUT_DIM = 64                      # hardcoded in the PyTorch module
COMPUTE_DTYPE = jnp.bfloat16        # activation / weight stream dtype (f32 accum)
CFG = {
    'BACKBONE': {
        'ENCODING': {
            'CHANNEL': [16, 32],
            'PADDING': [(1, 1, 1), (1, 1, 1)],
            'STRIDE':  [(2, 2, 2), (2, 2, 2)],
        },
        'TO_BEV': {
            'IS_Z_EMBED': False,
            'CHANNEL': [16, 16],
            'KERNEL_SIZE': [2, 4],
            'STRIDE': [2, 4],
            'PADDING': [0, 0],
        },
    }
}


# ----------------------------------------------------------------------------
# Pallas kernel 1: sparse 3D conv (dense-equivalent) with folded BN + ReLU +
# active-voxel mask.  Grid = (B, Zo, kz); kz is a reduction ("arbitrary") axis
# with a VMEM f32 accumulator; ky*kx taps accumulated in-kernel (no im2col).
# ----------------------------------------------------------------------------
def _sparse_conv3d_kernel(ph_ref, w_ref, b_ref, m_ref, o_ref, acc_ref, *,
                          taps, yo, xo, apply_relu):
    dz = pl.program_id(2)

    @pl.when(dz == 0)
    def _init():
        acc_ref[...] = jnp.zeros_like(acc_ref)

    cin = ph_ref.shape[-1]
    acc = acc_ref[...]
    for (t, p, ay, ax) in taps:                       # static unrolled ky*kx taps
        xs = ph_ref[p, 0, ay:ay + yo, ax:ax + xo, :].reshape(yo * xo, cin)
        acc = acc + jnp.dot(xs, w_ref[0, t], preferred_element_type=jnp.float32)
    acc_ref[...] = acc

    @pl.when(dz == pl.num_programs(2) - 1)
    def _finalize():
        y = acc_ref[...] + b_ref[...]                 # folded BN bias
        if apply_relu:
            y = jnp.maximum(y, 0.0)
        o_ref[...] = (y * m_ref[...]).astype(o_ref.dtype)


def sparse_conv3d_block(x_dense, x_mask, w_folded, b_folded, *,
                        stride, padding, subm, apply_relu=True):
    """spconv SparseConv3d / SubMConv3d -> folded BatchNorm1d(eval) -> ReLU.

    x_dense: [B, Z, Y, X, Cin] channels-last (bf16, zero at inactive voxels)
    x_mask : [B, Z, Y, X] float32 {0,1}
    w_folded: [kz, ky, kx, Cin, Cout] (BN scale folded, bf16); b_folded: [1, Cout] f32
    """
    B, Z, Y, X, Cin = x_dense.shape
    kz, ky, kx = w_folded.shape[:3]
    Cout = w_folded.shape[-1]
    sz, sy, sx = stride
    pz, py, px = padding
    Zo = (Z + 2 * pz - kz) // sz + 1
    Yo = (Y + 2 * py - ky) // sy + 1
    Xo = (X + 2 * px - kx) // sx + 1
    Yq = Yo + (ky - 1) // sy
    Xq = Xo + (kx - 1) // sx
    Zp = Z + 2 * pz
    P = sy * sx

    # conv padding + extra hi-side zeros so each y/x stride-phase slice is a
    # uniform (Yq, Xq) rectangle (the extra cells are never read by a valid tap)
    y_hi = max(Y + 2 * py, sy * Yq) - Y - py
    x_hi = max(X + 2 * px, sx * Xq) - X - px
    xp = jnp.pad(x_dense, ((0, 0), (pz, pz), (py, y_hi), (px, x_hi), (0, 0)))
    phases = jnp.stack([xp[:, :, ry::sy, rx::sx, :][:, :, :Yq, :Xq, :]
                        for ry in range(sy) for rx in range(sx)], axis=0)
    phases = phases.reshape(P, B * Zp, Yq, Xq, Cin)

    # output active-voxel mask (cheap, 1-channel, plain JAX)
    if subm:
        y_mask = x_mask                               # indices preserved (SubM)
    else:
        y_mask = lax.reduce_window(x_mask, 0.0, lax.max,
                                   (1, kz, ky, kx), (1, sz, sy, sx),
                                   ((0, 0), (pz, pz), (py, py), (px, px)))
    mask_flat = y_mask.reshape(B * Zo * Yo * Xo, 1).astype(jnp.float32)

    w_flat = w_folded.reshape(kz, ky * kx, Cin, Cout)
    taps = tuple((dy * kx + dx, (dy % sy) * sx + (dx % sx), dy // sy, dx // sx)
                 for dy in range(ky) for dx in range(kx))

    out_flat = pl.pallas_call(
        partial(_sparse_conv3d_kernel, taps=taps, yo=Yo, xo=Xo,
                apply_relu=apply_relu),
        out_shape=jax.ShapeDtypeStruct((B * Zo * Yo * Xo, Cout), x_dense.dtype),
        grid=(B, Zo, kz),
        in_specs=[
            pl.BlockSpec((P, 1, Yq, Xq, Cin),
                         lambda b, zo, dz: (0, b * Zp + zo * sz + dz, 0, 0, 0)),
            pl.BlockSpec((1, ky * kx, Cin, Cout), lambda b, zo, dz: (dz, 0, 0, 0)),
            pl.BlockSpec((1, Cout), lambda b, zo, dz: (0, 0)),
            pl.BlockSpec((Yo * Xo, 1), lambda b, zo, dz: (b * Zo + zo, 0)),
        ],
        out_specs=pl.BlockSpec((Yo * Xo, Cout), lambda b, zo, dz: (b * Zo + zo, 0)),
        scratch_shapes=[pltpu.VMEM((Yo * Xo, Cout), jnp.float32)],
        compiler_params=pltpu.CompilerParams(
            dimension_semantics=("parallel", "parallel", "arbitrary")),
    )(phases, w_flat, b_folded, mask_flat)

    return out_flat.reshape(B, Zo, Yo, Xo, Cout), y_mask


# ----------------------------------------------------------------------------
# Pallas kernel 2: fused matmul + bias (+ReLU) -- used for the kernel-1 sparse
# input_conv (per-active-voxel linear) and the ConvTranspose2d wide matmul.
# ----------------------------------------------------------------------------
def _matmul_bias_act_kernel(x_ref, w_ref, b_ref, o_ref, *, apply_relu):
    acc = jnp.dot(x_ref[...], w_ref[...], preferred_element_type=jnp.float32)
    y = acc + b_ref[...]
    if apply_relu:
        y = jnp.maximum(y, 0.0)
    o_ref[...] = y.astype(o_ref.dtype)


def fused_matmul(x, w, b, *, apply_relu, out_dtype=None, tm_max=512):
    """x [M,K] @ w [K,N] + b [1,N] (+ReLU).  bf16 streams, f32 accumulation."""
    M, K = x.shape
    N = w.shape[1]
    if out_dtype is None:
        out_dtype = x.dtype
    tm = min(tm_max, pl.cdiv(M, 8) * 8)
    m_pad = pl.cdiv(M, tm) * tm
    if m_pad != M:
        x = jnp.pad(x, ((0, m_pad - M), (0, 0)))
    out = pl.pallas_call(
        partial(_matmul_bias_act_kernel, apply_relu=apply_relu),
        out_shape=jax.ShapeDtypeStruct((m_pad, N), out_dtype),
        grid=(m_pad // tm,),
        in_specs=[
            pl.BlockSpec((tm, K), lambda i: (i, 0)),
            pl.BlockSpec((K, N), lambda i: (0, 0)),
            pl.BlockSpec((1, N), lambda i: (0, 0)),
        ],
        out_specs=pl.BlockSpec((tm, N), lambda i: (i, 0)),
        compiler_params=pltpu.CompilerParams(dimension_semantics=("parallel",)),
    )(x, w, b)
    return out[:M] if m_pad != M else out


# ----------------------------------------------------------------------------
# Pallas kernel 3: AttFusion (per-pixel scaled-dot-product attention over
# agents, ego query kept).  Blocks are [L, C, TP] with the pixel axis on lanes.
# ----------------------------------------------------------------------------
def _att_fusion_kernel(x_ref, o_ref, *, inv_sqrt_dim):
    x = x_ref[0].astype(jnp.float32)                        # [L, C, TP]
    score = jnp.sum(x[0:1] * x, axis=1) * inv_sqrt_dim      # [L, TP] (ego query)
    score = score - jnp.max(score, axis=0, keepdims=True)
    e = jnp.exp(score)
    attn = e * pl.reciprocal(jnp.sum(e, axis=0, keepdims=True), approx=True)
    fused = jnp.sum(attn[:, None, :] * x, axis=0)           # [C, TP]
    o_ref[...] = fused[None].astype(o_ref.dtype)


def _att_fusion_call(xg):
    """xg: [G, L, C, P] -> fused ego features [G, C, P] (f32)."""
    G, L, C, P = xg.shape
    tp = P
    if P % 128 == 0:
        for cand in (2048, 1024, 512, 256, 128):
            if P % cand == 0:
                tp = cand
                break
    return pl.pallas_call(
        partial(_att_fusion_kernel, inv_sqrt_dim=1.0 / math.sqrt(C)),
        out_shape=jax.ShapeDtypeStruct((G, C, P), jnp.float32),
        grid=(G, P // tp),
        in_specs=[pl.BlockSpec((1, L, C, tp), lambda g, i: (g, 0, 0, i))],
        out_specs=pl.BlockSpec((1, C, tp), lambda g, i: (g, 0, i)),
        compiler_params=pltpu.CompilerParams(
            dimension_semantics=("parallel", "parallel")),
    )(xg)


def att_fusion(bev, record_len):
    """bev: [num_agents, C, H, W]; fuse each record_len group (keep ego)."""
    B, C, H, W = bev.shape
    P = H * W
    x = bev.reshape(B, C, P)
    if len(set(record_len)) == 1:                 # batched path (equal groups)
        G = len(record_len)
        L = record_len[0]
        fused = _att_fusion_call(x.reshape(G, L, C, P))
    else:
        outs, start = [], 0
        for n in record_len:
            outs.append(_att_fusion_call(x[start:start + n][None])[0])
            start += n
        fused = jnp.stack(outs, axis=0)
    return fused.reshape(len(record_len), C, H, W)


# ----------------------------------------------------------------------------
# ConvTranspose2d (kernel==stride, padding==0) + folded BN + ReLU:
# one wide matmul (lane-dense N = Cout*k*k) + pixel-shuffle reshape.
# ----------------------------------------------------------------------------
def conv_transpose2d_block(bev2d, w_wide, b_wide, cout, k):
    B, H, W, Cin = bev2d.shape
    y = fused_matmul(bev2d.reshape(B * H * W, Cin), w_wide, b_wide, apply_relu=True)
    y = y.reshape(B, H, W, cout, k, k)
    y = jnp.transpose(y, (0, 3, 1, 4, 2, 5)).reshape(B, cout, H * k, W * k)
    return y                                       # NCHW (pixel-last for attention)


# ----------------------------------------------------------------------------
# Parameters: deterministic synthetic init (torch-like layouts), then fold
# eval-mode BN into the weights and cast the streams to bf16.
# ----------------------------------------------------------------------------
def init_params(key):
    keys = iter(jax.random.split(key, 256))

    def nrm(shape, s=0.1):
        return s * jax.random.normal(next(keys), shape, jnp.float32)

    def bn(c):
        gamma = 1.0 + 0.05 * jax.random.normal(next(keys), (c,), jnp.float32)
        beta = 0.05 * jax.random.normal(next(keys), (c,), jnp.float32)
        rmean = 0.05 * jax.random.normal(next(keys), (c,), jnp.float32)
        rvar = jnp.ones((c,), jnp.float32)
        scale = gamma / jnp.sqrt(rvar + 1e-5)
        shift = beta - rmean * scale
        return scale, shift

    enc_ch = CFG['BACKBONE']['ENCODING']['CHANNEL']
    bev_ch = CFG['BACKBONE']['TO_BEV']['CHANNEL']
    bev_k = CFG['BACKBONE']['TO_BEV']['KERNEL_SIZE']
    Z = SPATIAL_SHAPE[0]

    params = {'input_conv': {'w': nrm((enc_ch[0], INPUT_DIM)), 'b': nrm((enc_ch[0],))}}
    for l in range(len(enc_ch)):
        cin = enc_ch[0] if l == 0 else enc_ch[l - 1]
        c = enc_ch[l]
        zk = math.ceil(Z / 2 ** (l + 1))
        lp = {
            'spconv_w': nrm((c, cin, 3, 3, 3)), 'spconv_b': nrm((c,)),
            'subma_w': nrm((c, c, 3, 3, 3)), 'subma_b': nrm((c,)),
            'submb_w': nrm((c, c, 3, 3, 3)), 'submb_b': nrm((c,)),
            'tobev_w': nrm((c, c, zk, 1, 1)), 'tobev_b': nrm((c,)),
            'ct_w': nrm((c, bev_ch[l], bev_k[l], bev_k[l])), 'ct_b': nrm((bev_ch[l],)),
        }
        lp['bn_scale'], lp['bn_shift'] = bn(c)
        lp['bna_scale'], lp['bna_shift'] = bn(c)
        lp['bnb_scale'], lp['bnb_shift'] = bn(c)
        lp['bnbev_scale'], lp['bnbev_shift'] = bn(c)
        lp['bnt_scale'], lp['bnt_shift'] = bn(bev_ch[l])
        params[f'layer{l}'] = lp
    return params


def fold_params(raw):
    dt = COMPUTE_DTYPE
    enc_ch = CFG['BACKBONE']['ENCODING']['CHANNEL']

    def fold3d(w, b, scale, shift):
        # torch [Cout, Cin, kz, ky, kx] -> kernel layout [kz, ky, kx, Cin, Cout]
        wf = jnp.transpose(w, (2, 3, 4, 1, 0)) * scale
        bf = (b * scale + shift)[None, :]
        return wf.astype(dt), bf.astype(jnp.float32)

    p = {'input_conv': {
        'w': raw['input_conv']['w'].T.astype(dt),                  # [64, C0]
        'b': raw['input_conv']['b'][None, :].astype(jnp.float32)}}
    for l in range(len(enc_ch)):
        r = raw[f'layer{l}']
        lp = {}
        lp['spconv_w'], lp['spconv_b'] = fold3d(r['spconv_w'], r['spconv_b'],
                                                r['bn_scale'], r['bn_shift'])
        lp['subma_w'], lp['subma_b'] = fold3d(r['subma_w'], r['subma_b'],
                                              r['bna_scale'], r['bna_shift'])
        lp['submb_w'], lp['submb_b'] = fold3d(r['submb_w'], r['submb_b'],
                                              r['bnb_scale'], r['bnb_shift'])
        lp['tobev_w'], lp['tobev_b'] = fold3d(r['tobev_w'], r['tobev_b'],
                                              r['bnbev_scale'], r['bnbev_shift'])
        cin, cout, kh, kw = r['ct_w'].shape
        scale_rep = jnp.repeat(r['bnt_scale'], kh * kw)
        shift_rep = jnp.repeat(r['bnt_shift'], kh * kw)
        b_rep = jnp.repeat(r['ct_b'], kh * kw)
        lp['ct_w'] = (r['ct_w'].reshape(cin, cout * kh * kw) * scale_rep).astype(dt)
        lp['ct_b'] = (b_rep * scale_rep + shift_rep)[None, :].astype(jnp.float32)
        lp['ct_cout'] = cout
        lp['ct_k'] = kh
        p[f'layer{l}'] = lp
    return p


# ----------------------------------------------------------------------------
# Forward pass
# ----------------------------------------------------------------------------
def radar_sparse_backbone_forward(params, dict_item):
    sp_features = dict_item['sp_features']        # [N, 64]
    sp_indices = dict_item['sp_indices']          # [N, 4] = (batch, z, y, x)
    batch_size = dict_item['batch_size']
    record_len = dict_item['record_len']
    Z, Y, X = SPATIAL_SHAPE
    enc_cfg = CFG['BACKBONE']['ENCODING']
    num_layer = len(enc_cfg['CHANNEL'])
    C0 = enc_cfg['CHANNEL'][0]

    # input_conv: kernel-1 sparse conv == per-active-voxel linear (Pallas matmul)
    feats = fused_matmul(sp_features.astype(COMPUTE_DTYPE),
                         params['input_conv']['w'], params['input_conv']['b'],
                         apply_relu=False)

    # densify (channels-last, inactive voxels == 0) + active-voxel mask
    b_i, z_i, y_i, x_i = (sp_indices[:, 0], sp_indices[:, 1],
                          sp_indices[:, 2], sp_indices[:, 3])
    x_dense = jnp.zeros((batch_size, Z, Y, X, C0), COMPUTE_DTYPE)
    x_dense = x_dense.at[b_i, z_i, y_i, x_i].set(feats)
    x_mask = jnp.zeros((batch_size, Z, Y, X), jnp.float32)
    x_mask = x_mask.at[b_i, z_i, y_i, x_i].set(1.0)

    list_bev = []
    for l in range(num_layer):
        p = params[f'layer{l}']
        # spconv{l} -> bn{l} (folded) -> relu   (strided sparse conv, dilated mask)
        x_dense, x_mask = sparse_conv3d_block(
            x_dense, x_mask, p['spconv_w'], p['spconv_b'],
            stride=enc_cfg['STRIDE'][l], padding=enc_cfg['PADDING'][l], subm=False)
        # subm{l}a / subm{l}b: index-preserving SAME conv masked to input active set
        x_dense, x_mask = sparse_conv3d_block(
            x_dense, x_mask, p['subma_w'], p['subma_b'],
            stride=(1, 1, 1), padding=(1, 1, 1), subm=True)
        x_dense, x_mask = sparse_conv3d_block(
            x_dense, x_mask, p['submb_w'], p['submb_b'],
            stride=(1, 1, 1), padding=(1, 1, 1), subm=True)
        # toBEV{l}: sparse conv (zk,1,1) -> bnBEV (folded) -> relu -> squeeze z
        bev_dense, _ = sparse_conv3d_block(
            x_dense, x_mask, p['tobev_w'], p['tobev_b'],
            stride=(1, 1, 1), padding=(0, 0, 0), subm=False)
        bev2d = bev_dense[:, 0]                    # [B, Yl, Xl, C] channels-last
        # convtrans2d{l} -> bnt{l} (folded) -> relu   (wide matmul + pixel shuffle)
        bev_up = conv_transpose2d_block(bev2d, p['ct_w'], p['ct_b'],
                                        p['ct_cout'], p['ct_k'])
        # Attn{l}: per-pixel attention fusion over agents per record_len group
        list_bev.append(att_fusion(bev_up, record_len))

    out = dict(dict_item)
    out['bev_feat'] = jnp.concatenate(list_bev, axis=1)
    return out


# ----------------------------------------------------------------------------
# Main
# ----------------------------------------------------------------------------
if __name__ == "__main__":
    key = jax.random.PRNGKey(0)
    k_feat, k_idx, k_param = jax.random.split(key, 3)
    params = fold_params(init_params(k_param))

    Z, Y, X = SPATIAL_SHAPE
    record_len = [2, 2]                 # two groups of two agents
    batch_size = sum(record_len)        # total agents
    n_per_sample = 64                   # active voxels per agent

    idx_keys = jax.random.split(k_idx, batch_size)
    idx_list = []
    for b in range(batch_size):
        flat = jax.random.choice(idx_keys[b], Z * Y * X, (n_per_sample,), replace=False)
        zc = (flat // (Y * X)).astype(jnp.int32)
        yc = ((flat // X) % Y).astype(jnp.int32)
        xc = (flat % X).astype(jnp.int32)
        bc = jnp.full((n_per_sample,), b, jnp.int32)
        idx_list.append(jnp.stack([bc, zc, yc, xc], axis=1))
    sp_indices = jnp.concatenate(idx_list, axis=0)
    sp_features = jax.random.normal(k_feat, (sp_indices.shape[0], INPUT_DIM), jnp.float32)

    dict_item = {
        'sp_features': sp_features,
        'sp_indices': sp_indices,
        'batch_size': batch_size,
        'record_len': record_len,
    }

    out = radar_sparse_backbone_forward(params, dict_item)
    bev = jax.block_until_ready(out['bev_feat'])
    expected = (len(record_len), sum(CFG['BACKBONE']['TO_BEV']['CHANNEL']), Y, X)
    assert bev.shape == expected, (bev.shape, expected)
    assert bool(jnp.all(jnp.isfinite(bev.astype(jnp.float32))))
    print("KERNEL_OK")
</pallas_src>

<mosaic_0001>
module attributes {stable_mosaic.version = 11 : i64} {
  func.func @_matmul_bias_act_kernel(%arg0: i32, %arg1: memref<256x64xbf16, #tpu.memory_space<vmem>>, %arg2: memref<64x16xbf16, #tpu.memory_space<vmem>>, %arg3: memref<1x16xf32, #tpu.memory_space<vmem>>, %arg4: memref<256x16xbf16, #tpu.memory_space<vmem>>) attributes {dimension_semantics = [#tpu.dimension_semantics<parallel>], iteration_bounds = array<i64: 1>, scalar_prefetch = 0 : i64, scratch_operands = 0 : i64, tpu.core_type = #tpu.core_type<tc>, window_params = [{transform_indices = @transform_0, window_bounds = array<i64: 256, 64>}, {pipeline_mode = #tpu.pipeline_mode<synchronous>, transform_indices = @transform_1, window_bounds = array<i64: 64, 16>}, {pipeline_mode = #tpu.pipeline_mode<synchronous>, transform_indices = @transform_2, window_bounds = array<i64: 1, 16>}, {transform_indices = @transform_3, window_bounds = array<i64: 256, 16>}]} {
    %c0 = arith.constant 0 : index
    %c0_0 = arith.constant 0 : index
    %0 = vector.load %arg1[%c0, %c0_0] : memref<256x64xbf16, #tpu.memory_space<vmem>>, vector<256x64xbf16>
    %c0_1 = arith.constant 0 : index
    %c0_2 = arith.constant 0 : index
    %1 = vector.load %arg2[%c0_1, %c0_2] : memref<64x16xbf16, #tpu.memory_space<vmem>>, vector<64x16xbf16>
    %cst = arith.constant dense<0.000000e+00> : vector<256x16xf32>
    %2 = tpu.matmul %0, %1, %cst {dimension_numbers = #tpu.dot_dimension_numbers<[1], [0], [0], [1], [0, 0, 1, 1], [], []>} : vector<256x64xbf16>, vector<64x16xbf16>, vector<256x16xf32> -> vector<256x16xf32>
    %c0_3 = arith.constant 0 : index
    %c0_4 = arith.constant 0 : index
    %3 = vector.load %arg3[%c0_3, %c0_4] : memref<1x16xf32, #tpu.memory_space<vmem>>, vector<1x16xf32>
    %4 = vector.broadcast %3 : vector<1x16xf32> to vector<256x16xf32>
    %5 = arith.addf %2, %4 : vector<256x16xf32>
    %6 = arith.truncf %5 : vector<256x16xf32> to vector<256x16xbf16>
    %c0_5 = arith.constant 0 : index
    %c0_6 = arith.constant 0 : index
    %7 = vector.load %arg4[%c0_5, %c0_6] : memref<256x16xbf16, #tpu.memory_space<vmem>>, vector<256x16xbf16>
    tpu.vector_store %arg4[%c0_5, %c0_6], %6 {strides = array<i32>} : memref<256x16xbf16, #tpu.memory_space<vmem>>, vector<256x16xbf16>,
    return
  }
  func.func @transform_0(%arg0: i32) -> (i32, i32) {
    %c0_i32 = arith.constant 0 : i32
    %c0_i32_0 = arith.constant 0 : i32
    return %arg0, %c0_i32 : i32, i32
  }
  func.func @transform_1(%arg0: i32) -> (i32, i32) {
    %c0_i32 = arith.constant 0 : i32
    %c0_i32_0 = arith.constant 0 : i32
    %c0_i32_1 = arith.constant 0 : i32
    return %c0_i32, %c0_i32_0 : i32, i32
  }
  func.func @transform_2(%arg0: i32) -> (i32, i32) {
    %c0_i32 = arith.constant 0 : i32
    %c0_i32_0 = arith.constant 0 : i32
    %c0_i32_1 = arith.constant 0 : i32
    return %c0_i32, %c0_i32_0 : i32, i32
  }
  func.func @transform_3(%arg0: i32) -> (i32, i32) {
    %c0_i32 = arith.constant 0 : i32
    %c0_i32_0 = arith.constant 0 : i32
    return %arg0, %c0_i32 : i32, i32
  }
}

</mosaic_0001>

<bundles_post_ra>
// kernel: tpu_custom_call.1
= control target key start
LH: loop header
LB: loop body
LE: loop exit
PB: predicated region body
PF: predicated region fallthrough
CT: control target
= control target key end

     0   :  { %vm166_vm0 = vcmask 523264   ;;  %vm504_vm1 = vcmask 125952   ;;  %s991_s1 = inlined_call_operand.vmem [shape: bf16[64,16], index: 1, kind: input, shape index: {}]   ;;  %s992_s0 = inlined_call_operand.vmem [shape: bf16[256,64], index: 0, kind: input, shape index: {}]   ;;  %s993_s2 = inlined_call_operand.vmem [shape: f32[1,16], index: 2, kind: input, shape index: {}]   ;;  %s994_s3 = inlined_call_operand.vmem [shape: bf16[256,16], index: 3, kind: output, shape index: {}]  }
   0x1   :  { %v710_v0 = vld [vmem:[%s991_s1] sm:$0xff]   ;;  %v711_v1 = vld [vmem:[%s991_s1 + $0x8] sm:$0xff]   ;;  %v712_v2 = vld [vmem:[%s991_s1 + $0x10] sm:$0xff]  }
   0x2   :  { %662 = vmatprep.subr.bf16.mxu0 %v710_v0  ;;  %702 = vmatprep.subr.bf16.mxu1 %v710_v0  ;;  %v714_v3 = vld [vmem:[%s992_s0] sm:$0xff]   ;;  %v713_v5 = vld [vmem:[%s991_s1 + $0x18] sm:$0xff]   ;;  %v716_v6 = vld [vmem:[%s992_s0 + $0x8] sm:$0xff]  }
   0x3   :  { %663 = vmatpush3.bf16.msra.mxu0 %v710_v0  ;;  %706 = vmatpush3.bf16.msra.mxu1 %v710_v0  ;;  %v715_v4 = vld [vmem:[%s992_s0 + $0x40] sm:$0xff]   ;;  %v717_v7 = vld [vmem:[%s992_s0 + $0x48] sm:$0xff]   ;;  %v718_v8 = vld [vmem:[%s992_s0 + $0x10] sm:$0xff]  }
   0x4   :  { %664 = vmatprep.subr.bf16.mxu0 %v711_v1  ;;  %703 = vmatprep.subr.bf16.mxu1 %v711_v1  ;;  %v719_v9 = vld [vmem:[%s992_s0 + $0x50] sm:$0xff]   ;;  %v720_v10 = vld [vmem:[%s992_s0 + $0x18] sm:$0xff]   ;;  %v722_v12 = vld [vmem:[%s992_s0 + $0x20] sm:$0xff]  }
   0x5   :  { %670 = vmatprep.mubr.msk.bf16.mxu0 %vm166_vm0, %v714_v3  ;;  %686 = vmatprep.mubr.msk.bf16.mxu1 %vm166_vm0, %v715_v4  ;;  %v721_v11 = vld [vmem:[%s992_s0 + $0x58] sm:$0xff]   ;;  %v723_v13 = vld [vmem:[%s992_s0 + $0x60] sm:$0xff]   ;;  %v724_v14 = vld [vmem:[%s992_s0 + $0x28] sm:$0xff]  }
   0x6   :  { %v725_v15 = vld [vmem:[%s992_s0 + $0x68] sm:$0xff]   ;;  %v726_v16 = vld [vmem:[%s992_s0 + $0x30] sm:$0xff]   ;;  %v728_v18 = vld [vmem:[%s992_s0 + $0x38] sm:$0xff]  }
   0x7   :  { %665 = vmatpush3.bf16.msra.mxu0 %v711_v1  ;;  %707 = vmatpush3.bf16.msra.mxu1 %v711_v1  ;;  %v727_v17 = vld [vmem:[%s992_s0 + $0x70] sm:$0xff]   ;;  %v729_v19 = vld [vmem:[%s992_s0 + $0x78] sm:$0xff]   ;;  %v829_v20 = vld [vmem:[%s993_s2] ss:$0 sm:$0xff] }
   0x8   :  { %666 = vmatprep.subr.bf16.mxu0 %v712_v2  ;;  %704 = vmatprep.subr.bf16.mxu1 %v712_v2 }
   0xb   :  { %667 = vmatpush3.bf16.msra.mxu0 %v712_v2  ;;  %708 = vmatpush3.bf16.msra.mxu1 %v712_v2 }
   0xc   :  { %668 = vmatprep.subr.bf16.mxu0 %v713_v5  ;;  %705 = vmatprep.subr.bf16.mxu1 %v713_v5 }
   0xf   :  { %669 = vmatpush3.bf16.msra.mxu0 %v713_v5  ;;  %709 = vmatpush3.bf16.msra.mxu1 %v713_v5 }
  0x12   :  { %671 = vmatmul.mubr.msk.bf16.vlgmr.msra.gmra.mrb[0].mxu0 %vm166_vm0, %v716_v6  ;;  %687 = vmatmul.mubr.msk.bf16.vlgmr.msra.gmra.mrb[0].mxu1 %vm166_vm0, %v717_v7 }
  0x13   :  { %674 = vmatprep.mubr.msk.bf16.mxu0 %vm166_vm0, %v718_v8  ;;  %690 = vmatprep.mubr.msk.bf16.mxu1 %vm166_vm0, %v719_v9 }
  0x1a   :  { %675 = vmatmul.mubr.msk.bf16.gmra.mrb[4].mxu0 %vm166_vm0, %v720_v10  ;;  %691 = vmatmul.mubr.msk.bf16.gmra.mrb[4].mxu1 %vm166_vm0, %v721_v11 }
  0x1b   :  { %678 = vmatprep.mubr.msk.bf16.mxu0 %vm166_vm0, %v722_v12  ;;  %694 = vmatprep.mubr.msk.bf16.mxu1 %vm166_vm0, %v723_v13 }
  0x22   :  { %679 = vmatmul.mubr.msk.bf16.gmra.mrb[8].mxu0 %vm166_vm0, %v724_v14  ;;  %695 = vmatmul.mubr.msk.bf16.gmra.mrb[8].mxu1 %vm166_vm0, %v725_v15 }
  0x23   :  { %682 = vmatprep.mubr.msk.bf16.mxu0 %vm166_vm0, %v726_v16  ;;  %698 = vmatprep.mubr.msk.bf16.mxu1 %vm166_vm0, %v727_v17 }
  0x2a   :  { %683 = vmatmul.mubr.msk.bf16.gmra.mrb[12].mxu0 %vm166_vm0, %v728_v18  ;;  %699 = vmatmul.mubr.msk.bf16.gmra.mrb[12].mxu1 %vm166_vm0, %v729_v19 }
  0xe5   :  { %v672_v21 = vpop.f32.mrb[0].mxu0  ;;  %v688_v22 = vpop.f32.mrb[0].mxu1 }
  0xe6   :  { %v258_v23 = vadd.f32 %v672_v21, %v829_v20  ;;  %v322_v24 = vadd.f32 %v688_v22, %v829_v20  ;;  %v249_v25 = vpop.f32.mrb[1].mxu0  ;;  %v313_v26 = vpop.f32.mrb[1].mxu1 }
  0xe7   :  { %v250_v27 = vadd.f32 %v829_v20, %v249_v25  ;;  %v314_v28 = vadd.f32 %v829_v20, %v313_v26  ;;  %v673_v29 = vpop.f32.mrb[2].mxu0  ;;  %v689_v30 = vpop.f32.mrb[2].mxu1 }
  0xe8   :  { %v612_v31 = vpack.c.bf16 %v258_v23, %v258_v23  ;;  %v628_v32 = vpack.c.bf16 %v322_v24, %v322_v24  ;;  %v261_v33 = vadd.f32 %v673_v29, %v829_v20  ;;  %v325_v34 = vadd.f32 %v689_v30, %v829_v20  ;;  %v252_v35 = vpop.f32.mrb[3].mxu0  ;;  %v316_v36 = vpop.f32.mrb[3].mxu1 }
  0xe9   :  { %v610_v37 = vpack.c.bf16 %v250_v27, %v250_v27  ;;  %v626_v38 = vpack.c.bf16 %v314_v28, %v314_v28  ;;  %v253_v39 = vadd.f32 %v829_v20, %v252_v35  ;;  %v317_v40 = vadd.f32 %v829_v20, %v316_v36 }
  0xea   :  { %507 = vst.msk [vmem:[%s994_s3 + $0x8] sm:$0xf] %vm504_vm1, %v612_v31  ;;  %523 = vst.msk [vmem:[%s994_s3 + $0x48] sm:$0xf] %vm504_vm1, %v628_v32  ;;  %v613_v41 = vpack.c.bf16 %v261_v33, %v261_v33  ;;  %v629_v42 = vpack.c.bf16 %v325_v34, %v325_v34 }
  0xeb   :  { %505 = vst.msk [vmem:[%s994_s3] sm:$0xf] %vm504_vm1, %v610_v37  ;;  %521 = vst.msk [vmem:[%s994_s3 + $0x40] sm:$0xf] %vm504_vm1, %v626_v38  ;;  %v611_v43 = vpack.c.bf16 %v253_v39, %v253_v39  ;;  %v627_v44 = vpack.c.bf16 %v317_v40, %v317_v40 }
  0xec   :  { %508 = vst.msk [vmem:[%s994_s3 + $0xc] sm:$0xf] %vm504_vm1, %v613_v41  ;;  %524 = vst.msk [vmem:[%s994_s3 + $0x4c] sm:$0xf] %vm504_vm1, %v629_v42 }
  0xed   :  { %506 = vst.msk [vmem:[%s994_s3 + $0x4] sm:$0xf] %vm504_vm1, %v611_v43  ;;  %522 = vst.msk [vmem:[%s994_s3 + $0x44] sm:$0xf] %vm504_vm1, %v627_v44  ;;  %v676_v45 = vpop.f32.mrb[4].mxu0  ;;  %v692_v46 = vpop.f32.mrb[4].mxu1 }
  0xee   :  { %v274_v47 = vadd.f32 %v676_v45, %v829_v20  ;;  %v338_v48 = vadd.f32 %v692_v46, %v829_v20  ;;  %v265_v49 = vpop.f32.mrb[5].mxu0  ;;  %v329_v50 = vpop.f32.mrb[5].mxu1 }
  0xef   :  { %v266_v51 = vadd.f32 %v829_v20, %v265_v49  ;;  %v330_v52 = vadd.f32 %v829_v20, %v329_v50  ;;  %v677_v53 = vpop.f32.mrb[6].mxu0  ;;  %v693_v54 = vpop.f32.mrb[6].mxu1 }
  0xf0   :  { %v616_v55 = vpack.c.bf16 %v274_v47, %v274_v47  ;;  %v632_v56 = vpack.c.bf16 %v338_v48, %v338_v48  ;;  %v277_v57 = vadd.f32 %v677_v53, %v829_v20  ;;  %v341_v58 = vadd.f32 %v693_v54, %v829_v20  ;;  %v268_v59 = vpop.f32.mrb[7].mxu0  ;;  %v332_v60 = vpop.f32.mrb[7].mxu1 }
  0xf1   :  { %v614_v61 = vpack.c.bf16 %v266_v51, %v266_v51  ;;  %v630_v62 = vpack.c.bf16 %v330_v52, %v330_v52  ;;  %v269_v63 = vadd.f32 %v829_v20, %v268_v59  ;;  %v333_v0 = vadd.f32 %v829_v20, %v332_v60 }
  0xf2   :  { %511 = vst.msk [vmem:[%s994_s3 + $0x18] sm:$0xf] %vm504_vm1, %v616_v55  ;;  %527 = vst.msk [vmem:[%s994_s3 + $0x58] sm:$0xf] %vm504_vm1, %v632_v56  ;;  %v617_v1 = vpack.c.bf16 %v277_v57, %v277_v57  ;;  %v633_v2 = vpack.c.bf16 %v341_v58, %v341_v58 }
  0xf3   :  { %509 = vst.msk [vmem:[%s994_s3 + $0x10] sm:$0xf] %vm504_vm1, %v614_v61  ;;  %525 = vst.msk [vmem:[%s994_s3 + $0x50] sm:$0xf] %vm504_vm1, %v630_v62  ;;  %v615_v3 = vpack.c.bf16 %v269_v63, %v269_v63  ;;  %v631_v4 = vpack.c.bf16 %v333_v0, %v333_v0 }
  0xf4   :  { %512 = vst.msk [vmem:[%s994_s3 + $0x1c] sm:$0xf] %vm504_vm1, %v617_v1  ;;  %528 = vst.msk [vmem:[%s994_s3 + $0x5c] sm:$0xf] %vm504_vm1, %v633_v2 }
  0xf5   :  { %510 = vst.msk [vmem:[%s994_s3 + $0x14] sm:$0xf] %vm504_vm1, %v615_v3  ;;  %526 = vst.msk [vmem:[%s994_s3 + $0x54] sm:$0xf] %vm504_vm1, %v631_v4  ;;  %v680_v5 = vpop.f32.mrb[8].mxu0  ;;  %v696_v6 = vpop.f32.mrb[8].mxu1 }
  0xf6   :  { %v290_v7 = vadd.f32 %v680_v5, %v829_v20  ;;  %v354_v8 = vadd.f32 %v696_v6, %v829_v20  ;;  %v281_v9 = vpop.f32.mrb[9].mxu0  ;;  %v345_v10 = vpop.f32.mrb[9].mxu1 }
  0xf7   :  { %v282_v11 = vadd.f32 %v829_v20, %v281_v9  ;;  %v346_v12 = vadd.f32 %v829_v20, %v345_v10  ;;  %v681_v13 = vpop.f32.mrb[10].mxu0  ;;  %v697_v14 = vpop.f32.mrb[10].mxu1 }
  0xf8   :  { %v620_v15 = vpack.c.bf16 %v290_v7, %v290_v7  ;;  %v636_v16 = vpack.c.bf16 %v354_v8, %v354_v8  ;;  %v293_v17 = vadd.f32 %v681_v13, %v829_v20  ;;  %v357_v18 = vadd.f32 %v697_v14, %v829_v20  ;;  %v284_v19 = vpop.f32.mrb[11].mxu0  ;;  %v348_v21 = vpop.f32.mrb[11].mxu1 }
  0xf9   :  { %v618_v22 = vpack.c.bf16 %v282_v11, %v282_v11  ;;  %v634_v23 = vpack.c.bf16 %v346_v12, %v346_v12  ;;  %v285_v24 = vadd.f32 %v829_v20, %v284_v19  ;;  %v349_v25 = vadd.f32 %v829_v20, %v348_v21 }
  0xfa   :  { %515 = vst.msk [vmem:[%s994_s3 + $0x28] sm:$0xf] %vm504_vm1, %v620_v15  ;;  %531 = vst.msk [vmem:[%s994_s3 + $0x68] sm:$0xf] %vm504_vm1, %v636_v16  ;;  %v621_v26 = vpack.c.bf16 %v293_v17, %v293_v17  ;;  %v637_v27 = vpack.c.bf16 %v357_v18, %v357_v18 }
  0xfb   :  { %513 = vst.msk [vmem:[%s994_s3 + $0x20] sm:$0xf] %vm504_vm1, %v618_v22  ;;  %529 = vst.msk [vmem:[%s994_s3 + $0x60] sm:$0xf] %vm504_vm1, %v634_v23  ;;  %v619_v28 = vpack.c.bf16 %v285_v24, %v285_v24  ;;  %v635_v29 = vpack.c.bf16 %v349_v25, %v349_v25 }
  0xfc   :  { %516 = vst.msk [vmem:[%s994_s3 + $0x2c] sm:$0xf] %vm504_vm1, %v621_v26  ;;  %532 = vst.msk [vmem:[%s994_s3 + $0x6c] sm:$0xf] %vm504_vm1, %v637_v27 }
  0xfd   :  { %514 = vst.msk [vmem:[%s994_s3 + $0x24] sm:$0xf] %vm504_vm1, %v619_v28  ;;  %530 = vst.msk [vmem:[%s994_s3 + $0x64] sm:$0xf] %vm504_vm1, %v635_v29  ;;  %v684_v30 = vpop.f32.mrb[12].mxu0  ;;  %v700_v31 = vpop.f32.mrb[12].mxu1 }
  0xfe   :  { %v306_v32 = vadd.f32 %v684_v30, %v829_v20  ;;  %v370_v33 = vadd.f32 %v700_v31, %v829_v20  ;;  %v297_v34 = vpop.f32.mrb[13].mxu0  ;;  %v361_v35 = vpop.f32.mrb[13].mxu1 }
  0xff   :  { %v298_v36 = vadd.f32 %v829_v20, %v297_v34  ;;  %v362_v37 = vadd.f32 %v829_v20, %v361_v35  ;;  %v685_v38 = vpop.f32.mrb[14].mxu0  ;;  %v701_v39 = vpop.f32.mrb[14].mxu1 }
 0x100   :  { %v624_v40 = vpack.c.bf16 %v306_v32, %v306_v32  ;;  %v640_v41 = vpack.c.bf16 %v370_v33, %v370_v33  ;;  %v309_v42 = vadd.f32 %v685_v38, %v829_v20  ;;  %v373_v43 = vadd.f32 %v701_v39, %v829_v20  ;;  %v300_v44 = vpop.f32.mrb[15].mxu0  ;;  %v364_v45 = vpop.f32.mrb[15].mxu1 }
 0x101   :  { %v622_v46 = vpack.c.bf16 %v298_v36, %v298_v36  ;;  %v638_v47 = vpack.c.bf16 %v362_v37, %v362_v37  ;;  %v301_v48 = vadd.f32 %v829_v20, %v300_v44  ;;  %v365_v49 = vadd.f32 %v829_v20, %v364_v45 }
 0x102   :  { %519 = vst.msk [vmem:[%s994_s3 + $0x38] sm:$0xf] %vm504_vm1, %v624_v40  ;;  %535 = vst.msk [vmem:[%s994_s3 + $0x78] sm:$0xf] %vm504_vm1, %v640_v41  ;;  %v625_v50 = vpack.c.bf16 %v309_v42, %v309_v42  ;;  %v641_v51 = vpack.c.bf16 %v373_v43, %v373_v43 }
 0x103   :  { %517 = vst.msk [vmem:[%s994_s3 + $0x30] sm:$0xf] %vm504_vm1, %v622_v46  ;;  %533 = vst.msk [vmem:[%s994_s3 + $0x70] sm:$0xf] %vm504_vm1, %v638_v47  ;;  %v623_v20 = vpack.c.bf16 %v301_v48, %v301_v48  ;;  %v639_v52 = vpack.c.bf16 %v365_v49, %v365_v49 }
 0x104   :  { %520 = vst.msk [vmem:[%s994_s3 + $0x3c] sm:$0xf] %vm504_vm1, %v625_v50  ;;  %536 = vst.msk [vmem:[%s994_s3 + $0x7c] sm:$0xf] %vm504_vm1, %v641_v51 }
 0x105   :  { %518 = vst.msk [vmem:[%s994_s3 + $0x34] sm:$0xf] %vm504_vm1, %v623_v20  ;;  %534 = vst.msk [vmem:[%s994_s3 + $0x74] sm:$0xf] %vm504_vm1, %v639_v52 }

</bundles_post_ra>
